<compile_context>
chip_gen: v5e
topology: v5e:2x2
jax: 0.10.0
libtpu: 0.0.40
codegen_flags: <defaults>
</compile_context>

<pallas_src>
import functools
import math

import jax
import jax.numpy as jnp
from jax.experimental import pallas as pl
from jax.experimental.pallas import tpu as pltpu

_NEG_INF = -1e30
_VMEM_LIMIT = 48 * 1024 * 1024  # safe on v5e/v6e (128 MiB) and v7x (64 MiB)


def _round_up(x, m):
    return ((x + m - 1) // m) * m


# ---------------------------------------------------------------------------
# Tiled matmul kernels (token-major LHS, [in, out] RHS), f32 VMEM accumulator.
# ---------------------------------------------------------------------------
def _matmul_kernel(x_ref, w_ref, o_ref, acc_ref):
    @pl.when(pl.program_id(2) == 0)
    def _():
        acc_ref[...] = jnp.zeros_like(acc_ref)

    acc_ref[...] += jnp.dot(x_ref[...], w_ref[...],
                            preferred_element_type=jnp.float32)

    @pl.when(pl.program_id(2) == pl.num_programs(2) - 1)
    def _():
        o_ref[...] = acc_ref[...].astype(o_ref.dtype)


def _matmul_rope_kernel(x_ref, w_ref, cos_ref, sin_ref, rot_ref, o_ref, acc_ref):
    """Matmul with fused interleaved-RoPE epilogue.

    out = acc * cos + (acc @ R) * sin, where R is block-diagonal with 2x2
    blocks [[0, 1], [-1, 0]]:  (acc @ R)[:, 2i] = -acc[:, 2i+1],
                               (acc @ R)[:, 2i+1] = acc[:, 2i].
    Columns with (cos=1, sin=0) — the V segment — pass through unchanged.
    """
    @pl.when(pl.program_id(2) == 0)
    def _():
        acc_ref[...] = jnp.zeros_like(acc_ref)

    acc_ref[...] += jnp.dot(x_ref[...], w_ref[...],
                            preferred_element_type=jnp.float32)

    @pl.when(pl.program_id(2) == pl.num_programs(2) - 1)
    def _():
        acc = acc_ref[...]
        rot = jnp.dot(acc, rot_ref[...], preferred_element_type=jnp.float32)
        out = acc * cos_ref[...] + rot * sin_ref[...]
        o_ref[...] = out.astype(o_ref.dtype)


def pallas_matmul(x, w, cos=None, sin=None, *, tm=128, tn=128, tk=256,
                  out_dtype=None):
    """x: (M, K); w: (K, N) (pre-transposed Linear weight). Optional fused RoPE
    epilogue via per-token cos/sin tables of shape (M, N)."""
    M, K = x.shape
    K2, N = w.shape
    assert K == K2
    out_dtype = out_dtype if out_dtype is not None else x.dtype

    # Large tiles per the perf review, clamped (and 16-aligned) for small demos.
    tm = min(tm, _round_up(M, 16))
    tn = min(tn, _round_up(N, 128))
    tk = min(tk, _round_up(K, 128))
    Mp, Kp, Np = _round_up(M, tm), _round_up(K, tk), _round_up(N, tn)

    xp = jnp.pad(x, ((0, Mp - M), (0, Kp - K))) if (Mp, Kp) != (M, K) else x
    wp = jnp.pad(w, ((0, Kp - K), (0, Np - N))) if (Kp, Np) != (K, N) else w
    grid = (Mp // tm, Np // tn, Kp // tk)

    if cos is None:
        kernel = _matmul_kernel
        in_specs = [
            pl.BlockSpec((tm, tk), lambda i, j, k: (i, k)),
            pl.BlockSpec((tk, tn), lambda i, j, k: (k, j)),
        ]
        args = (xp, wp)
    else:
        cos = cos.astype(jnp.float32)
        sin = sin.astype(jnp.float32)
        cp = jnp.pad(cos, ((0, Mp - M), (0, Np - N))) if (Mp, Np) != cos.shape else cos
        sp = jnp.pad(sin, ((0, Mp - M), (0, Np - N))) if (Mp, Np) != sin.shape else sin
        # Block-local pair-rotation matrix (same for every N block since tn is even).
        rot = jnp.kron(jnp.eye(tn // 2, dtype=jnp.float32),
                       jnp.array([[0.0, 1.0], [-1.0, 0.0]], jnp.float32))
        kernel = _matmul_rope_kernel
        in_specs = [
            pl.BlockSpec((tm, tk), lambda i, j, k: (i, k)),
            pl.BlockSpec((tk, tn), lambda i, j, k: (k, j)),
            pl.BlockSpec((tm, tn), lambda i, j, k: (i, j)),
            pl.BlockSpec((tm, tn), lambda i, j, k: (i, j)),
            pl.BlockSpec((tn, tn), lambda i, j, k: (0, 0)),
        ]
        args = (xp, wp, cp, sp, rot)

    out = pl.pallas_call(
        kernel,
        out_shape=jax.ShapeDtypeStruct((Mp, Np), out_dtype),
        grid_spec=pltpu.PrefetchScalarGridSpec(
            num_scalar_prefetch=0,
            grid=grid,
            in_specs=in_specs,
            out_specs=pl.BlockSpec((tm, tn), lambda i, j, k: (i, j)),
            scratch_shapes=[pltpu.VMEM((tm, tn), jnp.float32)],
        ),
        compiler_params=pltpu.CompilerParams(
            dimension_semantics=("parallel", "parallel", "arbitrary"),
            vmem_limit_bytes=_VMEM_LIMIT,
        ),
    )(*args)

    if (Mp, Np) != (M, N):
        out = out[:M, :N]
    return out


# ---------------------------------------------------------------------------
# Attention core: per-(batch, head) scores -> softmax -> weighted values.
# ---------------------------------------------------------------------------
def _attn_kernel(q_ref, k_ref, v_ref, mask_ref, o_ref, *, scale):
    S, hd = q_ref.shape[2], q_ref.shape[3]
    Lp = k_ref.shape[2]
    q = q_ref[...].reshape(S, hd).astype(jnp.float32)
    k = k_ref[...].reshape(Lp, hd).astype(jnp.float32)
    v = v_ref[...].reshape(Lp, hd)

    s = jax.lax.dot_general(q, k, (((1,), (1,)), ((), ())),
                            preferred_element_type=jnp.float32)     # (S, Lp)
    s = s * scale + mask_ref[...]
    m = jnp.max(s, axis=-1, keepdims=True)
    p = jnp.exp(s - m)
    l = jnp.sum(p, axis=-1, keepdims=True)
    probs = (p / l).astype(v.dtype)

    o = jnp.dot(probs, v, preferred_element_type=jnp.float32)       # (S, hd)
    o_ref[...] = o.reshape(1, 1, S, hd).astype(o_ref.dtype)


def pallas_attention(q, k, v, mask):
    """q: (B, H, S, hd); k/v: (B, H, L, hd); mask: (S, L) additive (f32)."""
    bsz, hq, S, hd = q.shape
    _, hkv, L, _ = k.shape
    assert hq == hkv, "reference module requires n_heads == n_kv_heads"

    Lp = _round_up(L, 128)  # lane-dense scores; padded keys get -1e30 mask
    if Lp != L:
        k = jnp.pad(k, ((0, 0), (0, 0), (0, Lp - L), (0, 0)))
        v = jnp.pad(v, ((0, 0), (0, 0), (0, Lp - L), (0, 0)))
        mask = jnp.pad(mask, ((0, 0), (0, Lp - L)), constant_values=_NEG_INF)
    mask = mask.astype(jnp.float32)

    kernel = functools.partial(_attn_kernel, scale=1.0 / math.sqrt(hd))
    return pl.pallas_call(
        kernel,
        out_shape=jax.ShapeDtypeStruct((bsz, hq, S, hd), q.dtype),
        grid_spec=pltpu.PrefetchScalarGridSpec(
            num_scalar_prefetch=0,
            grid=(bsz, hq),
            in_specs=[
                pl.BlockSpec((1, 1, S, hd), lambda b, h: (b, h, 0, 0)),
                pl.BlockSpec((1, 1, Lp, hd), lambda b, h: (b, h, 0, 0)),
                pl.BlockSpec((1, 1, Lp, hd), lambda b, h: (b, h, 0, 0)),
                pl.BlockSpec((S, Lp), lambda b, h: (0, 0)),
            ],
            out_specs=pl.BlockSpec((1, 1, S, hd), lambda b, h: (b, h, 0, 0)),
        ),
        compiler_params=pltpu.CompilerParams(
            dimension_semantics=("parallel", "parallel"),
            vmem_limit_bytes=_VMEM_LIMIT,
        ),
    )(q, k, v, mask)


# ---------------------------------------------------------------------------
# Full Attention.forward
# ---------------------------------------------------------------------------
def _rope_tables(cos, sin, bsz, n_heads, n_kv_heads, head_dim):
    """Expand (seq, hd//2) cos/sin into (bsz*seq, (n_heads+2*n_kv_heads)*hd)
    tables matching the fused [Q|K|V] projection output (V gets cos=1, sin=0)."""
    seq = cos.shape[0]
    c2 = jnp.repeat(cos, 2, axis=-1)                       # (seq, hd): c0,c0,c1,c1,...
    s2 = jnp.repeat(sin, 2, axis=-1)
    cos_row = jnp.concatenate(
        [jnp.tile(c2, (1, n_heads)), jnp.tile(c2, (1, n_kv_heads)),
         jnp.ones((seq, n_kv_heads * head_dim), cos.dtype)], axis=-1)
    sin_row = jnp.concatenate(
        [jnp.tile(s2, (1, n_heads)), jnp.tile(s2, (1, n_kv_heads)),
         jnp.zeros((seq, n_kv_heads * head_dim), sin.dtype)], axis=-1)
    return jnp.tile(cos_row, (bsz, 1)), jnp.tile(sin_row, (bsz, 1))


def attention_forward(x, start_pos, cos, sin, mask, wqkv_t, wo_t,
                      cache_k, cache_v, *, n_heads, n_kv_heads, head_dim):
    """x: (bsz, seq, dim); wqkv_t: (dim, (n_heads+2*n_kv)*hd); wo_t: (dim, dim).
    Returns (out, new_cache_k, new_cache_v)."""
    bsz, seqlen, dim = x.shape
    assert n_heads == n_kv_heads, "reference module requires n_heads == n_kv_heads"
    M = bsz * seqlen
    q_dim = n_heads * head_dim
    kv_dim = n_kv_heads * head_dim

    # --- fused QKV projection with RoPE applied in the kernel epilogue -----
    cos_full, sin_full = _rope_tables(cos, sin, bsz, n_heads, n_kv_heads, head_dim)
    qkv = pallas_matmul(x.reshape(M, dim), wqkv_t, cos_full, sin_full)

    xq = qkv[:, :q_dim].reshape(bsz, seqlen, n_heads, head_dim)
    xk = qkv[:, q_dim:q_dim + kv_dim].reshape(bsz, seqlen, n_kv_heads, head_dim)
    xv = qkv[:, q_dim + kv_dim:].reshape(bsz, seqlen, n_kv_heads, head_dim)

    # --- KV cache update (functional) --------------------------------------
    # TODO(synk): cache write is a plain XLA slice-update; could be a Pallas
    # kernel with input_output_aliases for a true in-place update.
    cache_k = cache_k.astype(xq.dtype).at[:bsz, start_pos:start_pos + seqlen].set(xk)
    cache_v = cache_v.astype(xq.dtype).at[:bsz, start_pos:start_pos + seqlen].set(xv)

    L = start_pos + seqlen
    keys = cache_k[:bsz, :L]
    values = cache_v[:bsz, :L]

    q_t = jnp.transpose(xq, (0, 2, 1, 3))      # (bsz, H, S, hd)
    k_t = jnp.transpose(keys, (0, 2, 1, 3))    # (bsz, H, L, hd)
    v_t = jnp.transpose(values, (0, 2, 1, 3))

    if mask is None:
        mask = jnp.zeros((seqlen, L), jnp.float32)

    attn = pallas_attention(q_t, k_t, v_t, mask)                    # (bsz,H,S,hd)
    attn2d = jnp.transpose(attn, (0, 2, 1, 3)).reshape(M, q_dim)

    out = pallas_matmul(attn2d, wo_t)                               # (M, dim)
    return out.reshape(bsz, seqlen, dim), cache_k, cache_v


# ---------------------------------------------------------------------------
# Pure-JAX reference (mirrors the PyTorch module)
# ---------------------------------------------------------------------------
def _rope_ref(x, cos, sin):
    b, s, h, d = x.shape
    xr = x.astype(jnp.float32).reshape(b, s, h, d // 2, 2)
    x0, x1 = xr[..., 0], xr[..., 1]
    c = cos[None, :, None, :]
    si = sin[None, :, None, :]
    o0 = x0 * c - x1 * si
    o1 = x0 * si + x1 * c
    return jnp.stack([o0, o1], axis=-1).reshape(b, s, h, d).astype(x.dtype)


def _attention_ref(x, start_pos, cos, sin, mask, wq, wk, wv, wo,
                   cache_k, cache_v, n_heads, n_kv_heads, head_dim):
    bsz, S, dim = x.shape
    xq = (x @ wq.T).reshape(bsz, S, n_heads, head_dim)
    xk = (x @ wk.T).reshape(bsz, S, n_kv_heads, head_dim)
    xv = (x @ wv.T).reshape(bsz, S, n_kv_heads, head_dim)
    xq = _rope_ref(xq, cos, sin)
    xk = _rope_ref(xk, cos, sin)
    ck = cache_k.astype(xq.dtype).at[:bsz, start_pos:start_pos + S].set(xk)
    cv = cache_v.astype(xq.dtype).at[:bsz, start_pos:start_pos + S].set(xv)
    L = start_pos + S
    q = jnp.transpose(xq, (0, 2, 1, 3))
    k = jnp.transpose(ck[:bsz, :L], (0, 2, 1, 3))
    v = jnp.transpose(cv[:bsz, :L], (0, 2, 1, 3))
    scores = jnp.einsum("bhsd,bhld->bhsl", q, k) / math.sqrt(head_dim)
    if mask is not None:
        scores = scores + mask[None, None]
    probs = jax.nn.softmax(scores.astype(jnp.float32), axis=-1).astype(scores.dtype)
    o = jnp.einsum("bhsl,bhld->bhsd", probs, v)
    o = jnp.transpose(o, (0, 2, 1, 3)).reshape(bsz, S, -1)
    return o @ wo.T, ck, cv


if __name__ == "__main__":
    # Small, MXU/lane-friendly demo shapes.
    dim = 128
    n_heads = 4
    n_kv_heads = 4
    head_dim = dim // n_heads          # 32
    max_batch, max_seq = 2, 16
    bsz, seqlen = 2, 8
    start_pos = 4                      # exercise the pre-filled cache prefix

    key = jax.random.PRNGKey(0)
    kx, kq, kk, kv, ko, kck, kcv = jax.random.split(key, 7)
    x = jax.random.normal(kx, (bsz, seqlen, dim), jnp.float32)
    scale = 0.02
    # PyTorch nn.Linear(in, out).weight layout is (out, in).
    wq = jax.random.normal(kq, (n_heads * head_dim, dim), jnp.float32) * scale
    wk = jax.random.normal(kk, (n_kv_heads * head_dim, dim), jnp.float32) * scale
    wv = jax.random.normal(kv, (n_kv_heads * head_dim, dim), jnp.float32) * scale
    wo = jax.random.normal(ko, (dim, n_heads * head_dim), jnp.float32) * scale
    # Non-zero cache = K/V written by previous decode steps.
    cache_k = jax.random.normal(kck, (max_batch, max_seq, n_kv_heads, head_dim),
                                jnp.float32) * 0.1
    cache_v = jax.random.normal(kcv, (max_batch, max_seq, n_kv_heads, head_dim),
                                jnp.float32) * 0.1

    # Rotary frequencies (LLaMA precompute), sliced at [start_pos : start_pos+seq].
    theta = 10000.0
    freqs = 1.0 / (theta ** (jnp.arange(0, head_dim, 2, dtype=jnp.float32) / head_dim))
    t = jnp.arange(max_seq, dtype=jnp.float32)
    angles = jnp.outer(t, freqs)                              # (max_seq, hd//2)
    cos = jnp.cos(angles)[start_pos:start_pos + seqlen]
    sin = jnp.sin(angles)[start_pos:start_pos + seqlen]

    # Causal mask over new tokens, zeros over the cached prefix.
    mask = jnp.triu(jnp.full((seqlen, seqlen), _NEG_INF, jnp.float32), k=1)
    mask = jnp.concatenate([jnp.zeros((seqlen, start_pos), jnp.float32), mask], axis=1)

    # Kernel-side weights: pre-transposed to [in, out]; Q/K/V fused column-wise.
    wqkv_t = jnp.concatenate([wq.T, wk.T, wv.T], axis=1)      # (dim, 3*dim)
    wo_t = wo.T                                               # (dim, dim)

    out, ck_new, cv_new = attention_forward(
        x, start_pos, cos, sin, mask, wqkv_t, wo_t, cache_k, cache_v,
        n_heads=n_heads, n_kv_heads=n_kv_heads, head_dim=head_dim)
    out = jax.block_until_ready(out)

    ref_out, ref_ck, ref_cv = _attention_ref(
        x, start_pos, cos, sin, mask, wq, wk, wv, wo, cache_k, cache_v,
        n_heads, n_kv_heads, head_dim)

    assert out.shape == (bsz, seqlen, dim)
    assert jnp.allclose(out, ref_out, atol=1e-3, rtol=1e-3), "output mismatch"
    assert jnp.allclose(ck_new, ref_ck, atol=1e-3, rtol=1e-3), "cache_k mismatch"
    assert jnp.allclose(cv_new, ref_cv, atol=1e-3, rtol=1e-3), "cache_v mismatch"
    print("KERNEL_OK")
</pallas_src>

<mosaic_0001>
module attributes {stable_mosaic.version = 11 : i64} {
  func.func @_matmul_rope_kernel(%arg0: i32, %arg1: i32, %arg2: i32, %arg3: memref<16x128xf32, #tpu.memory_space<vmem>>, %arg4: memref<128x128xf32, #tpu.memory_space<vmem>>, %arg5: memref<16x128xf32, #tpu.memory_space<vmem>>, %arg6: memref<16x128xf32, #tpu.memory_space<vmem>>, %arg7: memref<128x128xf32, #tpu.memory_space<vmem>>, %arg8: memref<16x128xf32, #tpu.memory_space<vmem>>, %arg9: memref<16x128xf32, #tpu.memory_space<vmem>>) attributes {dimension_semantics = [#tpu.dimension_semantics<parallel>, #tpu.dimension_semantics<parallel>, #tpu.dimension_semantics<arbitrary>], iteration_bounds = array<i64: 1, 3, 1>, scalar_prefetch = 0 : i64, scratch_operands = 1 : i64, tpu.core_type = #tpu.core_type<tc>, window_params = [{transform_indices = @transform_0, window_bounds = array<i64: 16, 128>}, {transform_indices = @transform_1, window_bounds = array<i64: 128, 128>}, {transform_indices = @transform_2, window_bounds = array<i64: 16, 128>}, {transform_indices = @transform_3, window_bounds = array<i64: 16, 128>}, {pipeline_mode = #tpu.pipeline_mode<synchronous>, transform_indices = @transform_4, window_bounds = array<i64: 128, 128>}, {transform_indices = @transform_5, window_bounds = array<i64: 16, 128>}]} {
    %c0_i32 = arith.constant 0 : i32
    %0 = arith.cmpi eq, %arg2, %c0_i32 : i32
    %1 = arith.extui %0 : i1 to i32
    %c0_i32_0 = arith.constant 0 : i32
    %2 = arith.cmpi ne, %1, %c0_i32_0 : i32
    scf.if %2 {
      %cst_10 = arith.constant 0.000000e+00 : f32
      %12 = vector.broadcast %cst_10 : f32 to vector<16x128xf32>
      %c0_11 = arith.constant 0 : index
      %c0_12 = arith.constant 0 : index
      %13 = vector.load %arg9[%c0_11, %c0_12] : memref<16x128xf32, #tpu.memory_space<vmem>>, vector<16x128xf32>
      tpu.vector_store %arg9[%c0_11, %c0_12], %12 {strides = array<i32>} : memref<16x128xf32, #tpu.memory_space<vmem>>, vector<16x128xf32>,
    } else {
    }
    %c0 = arith.constant 0 : index
    %c0_1 = arith.constant 0 : index
    %3 = vector.load %arg9[%c0, %c0_1] : memref<16x128xf32, #tpu.memory_space<vmem>>, vector<16x128xf32>
    %c0_2 = arith.constant 0 : index
    %c0_3 = arith.constant 0 : index
    %4 = vector.load %arg3[%c0_2, %c0_3] : memref<16x128xf32, #tpu.memory_space<vmem>>, vector<16x128xf32>
    %c0_4 = arith.constant 0 : index
    %c0_5 = arith.constant 0 : index
    %5 = vector.load %arg4[%c0_4, %c0_5] : memref<128x128xf32, #tpu.memory_space<vmem>>, vector<128x128xf32>
    %cst = arith.constant dense<0.000000e+00> : vector<16x128xf32>
    %6 = tpu.matmul %4, %5, %cst {dimension_numbers = #tpu.dot_dimension_numbers<[1], [0], [0], [1], [0, 0, 1, 1], [], []>} : vector<16x128xf32>, vector<128x128xf32>, vector<16x128xf32> -> vector<16x128xf32>
    %7 = arith.addf %3, %6 : vector<16x128xf32>
    %c0_6 = arith.constant 0 : index
    %c0_7 = arith.constant 0 : index
    %8 = vector.load %arg9[%c0_6, %c0_7] : memref<16x128xf32, #tpu.memory_space<vmem>>, vector<16x128xf32>
    tpu.vector_store %arg9[%c0_6, %c0_7], %7 {strides = array<i32>} : memref<16x128xf32, #tpu.memory_space<vmem>>, vector<16x128xf32>,
    %c0_i32_8 = arith.constant 0 : i32
    %9 = arith.cmpi eq, %arg2, %c0_i32_8 : i32
    %10 = arith.extui %9 : i1 to i32
    %c0_i32_9 = arith.constant 0 : i32
    %11 = arith.cmpi ne, %10, %c0_i32_9 : i32
    scf.if %11 {
      %c0_10 = arith.constant 0 : index
      %c0_11 = arith.constant 0 : index
      %12 = vector.load %arg9[%c0_10, %c0_11] : memref<16x128xf32, #tpu.memory_space<vmem>>, vector<16x128xf32>
      %c0_12 = arith.constant 0 : index
      %c0_13 = arith.constant 0 : index
      %13 = vector.load %arg7[%c0_12, %c0_13] : memref<128x128xf32, #tpu.memory_space<vmem>>, vector<128x128xf32>
      %cst_14 = arith.constant dense<0.000000e+00> : vector<16x128xf32>
      %14 = tpu.matmul %12, %13, %cst_14 {dimension_numbers = #tpu.dot_dimension_numbers<[1], [0], [0], [1], [0, 0, 1, 1], [], []>} : vector<16x128xf32>, vector<128x128xf32>, vector<16x128xf32> -> vector<16x128xf32>
      %c0_15 = arith.constant 0 : index
      %c0_16 = arith.constant 0 : index
      %15 = vector.load %arg5[%c0_15, %c0_16] : memref<16x128xf32, #tpu.memory_space<vmem>>, vector<16x128xf32>
      %16 = arith.mulf %12, %15 : vector<16x128xf32>
      %c0_17 = arith.constant 0 : index
      %c0_18 = arith.constant 0 : index
      %17 = vector.load %arg6[%c0_17, %c0_18] : memref<16x128xf32, #tpu.memory_space<vmem>>, vector<16x128xf32>
      %18 = arith.mulf %14, %17 : vector<16x128xf32>
      %19 = arith.addf %16, %18 : vector<16x128xf32>
      %c0_19 = arith.constant 0 : index
      %c0_20 = arith.constant 0 : index
      %20 = vector.load %arg8[%c0_19, %c0_20] : memref<16x128xf32, #tpu.memory_space<vmem>>, vector<16x128xf32>
      tpu.vector_store %arg8[%c0_19, %c0_20], %19 {strides = array<i32>} : memref<16x128xf32, #tpu.memory_space<vmem>>, vector<16x128xf32>,
    } else {
    }
    return
  }
  func.func @transform_0(%arg0: i32, %arg1: i32, %arg2: i32) -> (i32, i32) {
    %c0_i32 = arith.constant 0 : i32
    return %arg0, %arg2 : i32, i32
  }
  func.func @transform_1(%arg0: i32, %arg1: i32, %arg2: i32) -> (i32, i32) {
    %c0_i32 = arith.constant 0 : i32
    return %arg2, %arg1 : i32, i32
  }
  func.func @transform_2(%arg0: i32, %arg1: i32, %arg2: i32) -> (i32, i32) {
    %c0_i32 = arith.constant 0 : i32
    return %arg0, %arg1 : i32, i32
  }
  func.func @transform_3(%arg0: i32, %arg1: i32, %arg2: i32) -> (i32, i32) {
    %c0_i32 = arith.constant 0 : i32
    return %arg0, %arg1 : i32, i32
  }
  func.func @transform_4(%arg0: i32, %arg1: i32, %arg2: i32) -> (i32, i32) {
    %c0_i32 = arith.constant 0 : i32
    %c0_i32_0 = arith.constant 0 : i32
    %c0_i32_1 = arith.constant 0 : i32
    return %c0_i32, %c0_i32_0 : i32, i32
  }
  func.func @transform_5(%arg0: i32, %arg1: i32, %arg2: i32) -> (i32, i32) {
    %c0_i32 = arith.constant 0 : i32
    return %arg0, %arg1 : i32, i32
  }
}

</mosaic_0001>

<bundles_post_ra>
// kernel: tpu_custom_call.1
= control target key start
LH: loop header
LB: loop body
LE: loop exit
PB: predicated region body
PF: predicated region fallthrough
CT: control target
= control target key end

     0   :  { %s1367_s0 = inlined_call_operand.hbm [shape: f32[16,128], index: 0, kind: input, shape index: {}]   ;;  %s1368_s1 = inlined_call_operand.hbm [shape: f32[128,384], index: 1, kind: input, shape index: {}]   ;;  %s1369_s2 = inlined_call_operand.hbm [shape: f32[16,384], index: 2, kind: input, shape index: {}]   ;;  %s1370_s3 = inlined_call_operand.hbm [shape: f32[16,384], index: 3, kind: input, shape index: {}]   ;;  %s1371_s4 = inlined_call_operand.hbm [shape: f32[128,128], index: 4, kind: input, shape index: {}]   ;;  %s1372_s5 = inlined_call_operand.hbm [shape: f32[16,384], index: 5, kind: output, shape index: {}]  }
   0x1   :  { %1382 = sst [smem:[#allocation23_spill]] %s1367_s0 }
   0x2   :  { %1383 = sst [smem:[#allocation24_spill]] %s1368_s1 }
   0x3   :  { %1384 = sst [smem:[#allocation25_spill]] %s1371_s4 }
   0x4   :  { %10 = vsyncpa [#allocation4], 0 }
   0x5   :  { %11 = vsyncpa [#allocation7], 0 }
   0x6   :  { %13 = vsyncpa [#allocation7 + $0x1], 0 }
   0x7   :  { %14 = vsyncpa [#allocation10], 0 }
   0x8   :  { %16 = vsyncpa [#allocation10 + $0x1], 0 }
   0x9   :  { %17 = vsyncpa [#allocation5], 0 }
   0xa   :  { %19 = vsyncpa [#allocation5 + $0x1], 0  ;;  %s1133_s18 = smov 0   ;;  %s1135_s19 = smov 0  }
   0xb   :  { %s1137_s20 = smov 0   ;;  %s1139_s21 = smov 0  }
   0xc   :  { %s1141_s22 = smov 0   ;;  %s1143_s23 = smov 0  }
   0xd LB: > { %1385 = sst [smem:[#allocation18_spill]] %s1081_s20  ;;  %s1164_s24 = sadd.s32 4294967295, %s1093_s23   ;;  %s1093_s23 = sphi %s1143_s23, %s25_s23   ;;  %s1089_s22 = sphi %s1141_s22, %s1407_s22   ;;  %s1085_s21 = sphi %s1139_s21, %s1406_s21   ;;  %s1081_s20 = sphi %s1137_s20, %s1405_s20   ;;  %s1077_s19 = sphi %s1135_s19, %s1409_s19   ;;  %s1073_s18 = sphi %s1133_s18, %s1408_s18  }
   0xe   : > { %1386 = sst [smem:[#allocation19_spill]] %s1089_s22  ;;  %s696_s25 = sadd.s32 4294967294, %s1093_s23  }
   0xf   : > { %p94_p0 = scmp.ne.s32.totalorder %s1077_s19, %s1073_s18  ;;  %p95_p1 = scmp.eq.s32.totalorder %s1164_s24, 0 }
  0x10   : > { %p197_p2 = scmp.eq.s32.totalorder %s1164_s24, 2  ;;  %p203_p3 = scmp.eq.s32.totalorder %s696_s25, 2 }
  0x11   : > { %p1173_p4 = por %p95_p1, %p94_p0  ;;  %p697_p5 = scmp.ge.s32.totalorder %s1093_s23, 1 }
  0x12   : > { %p1178_p6 = por %p203_p3, %p94_p0  ;;  %p210_p7 = scmp.lt.s32.totalorder %s1093_s23, 4 }
  0x13   : > { %s1391_s4 = sld [smem:[#allocation25_spill]]  ;;  %s1095_s7 = smov [#allocation11]  }
  0x14   : > { %s1388_s27 = scalar_select %p1178_p6, 1, 0 }
  0x15   : > { %p1183_p8 = pnand %p697_p5, %p210_p7  ;;  %s241_s8 = sshll.u32 %s1095_s7, 4  ;;  %s242_s8 = int_to_ptr.vmem [resolvable:$true] %s241_s8 }
  0x16   : > { %1389 = sst [smem:[#allocation20_spill]] %s1388_s27  ;;  %s1373_s10 = smov 128  }
  0x17   : > { %p766_p9 = pneg %p1183_p8  ;;  %s1375_s11 = smov 8  }
  0x18   : > { %s40_s12 = sadd.s32 1, %s1089_s22  ;;  %s81_s13 = sadd.s32 1, %s1081_s20 }
  0x19   : > { %s239_s6 = sshll.u32 %s1391_s4, 4  ;;  %p1194_p10 = pnand %p766_p9, %p95_p1  ;;  %s240_s6 = int_to_ptr.hbm [resolvable:$true] %s239_s6 }
  0x1a   : > { %p42_p11 = scmp.ge.s32.totalorder %s40_s12, 3  ;;  %p88_p12 = scmp.ne.s32.totalorder %s1081_s20, %s1077_s19 }
  0x1b   : > { %772 = dma.hbm_to_vmem [thread:$0]  (!%p1194_p10), %s240_s6, 2048, %s242_s8, [#allocation10], %s1373_s10, %s1373_s10, %s1375_s11  }
  0x1c   : > { %p89_p13 = scmp.eq.s32.totalorder %s1093_s23, 0  ;;  %s1411_s12 = smov (%p42_p11, %s40_s12), 0 }
  0x1d   : > { %1393 = sst [smem:[#allocation21_spill]] %s1411_s12  ;;  %p1216_p3 = por %p197_p2, %p88_p12 }
  0x1e   : > { %p1210_p0 = por %p89_p13, %p88_p12  ;;  %s77_s16 = ssub.s32 %s1089_s22, %s1411_s12 }
  0x1f   : > { %p789_p5 = scmp.lt.s32.totalorder %s1093_s23, 3  ;;  %p79_p7 = scmp.eq.s32.totalorder %s77_s16, 0 }
  0x20   : > { %s1381_s17 = sand.u32 1, %s1093_s23   ;;  %s257_s25 = sand.u32 1, %s1081_s20  }
  0x21   : > { %s1226_s29 = scalar_select %p79_p7, %s1081_s20, %s81_s13  }
  0x22   : > { %s701_s30 = sshll.u32 %s257_s25, 7  ;;  %s1229_s6 = sshll.u32 %s1089_s22, 3 }
  0x23   : > { %1396 = sst [smem:[#allocation22_spill]] %s1226_s29  ;;  %s259_s4 = scalar_lea.vmem [#allocation6], %s701_s30 }
  0x24   : > { %s1397_s1 = sld [smem:[#allocation24_spill]]  ;;  %s269_s12 = sshll.u32 %s259_s4, 4  ;;  %s270_s12 = int_to_ptr.vmem [resolvable:$true] %s269_s12 }
  0x25   : > { %p1239_p2 = pnand %p789_p5, %p1210_p0  ;;  %s703_s16 = sshll.u32 %s257_s25, 4 }
  0x26   : > { %s256_s22 = scalar_lea.sflag [#allocation7], %s1381_s17  ;;  %s1098_s7 = smov 384  }
  0x27   : > { %s1400_s30 = smov 128   ;;  %s1401_s0 = sld [smem:[#allocation23_spill]] }
  0x28   : > { %s290_s25 = scalar_lea.hbm %s1369_s2, %s1229_s6  ;;  %s307_s27 = scalar_lea.vmem [#allocation9], %s703_s16 }
  0x29   : > { %s291_s17 = sshll.u32 %s290_s25, 4  ;;  %s317_s25 = sshll.u32 %s307_s27, 4  ;;  %s292_s17 = int_to_ptr.hbm [resolvable:$true] %s291_s17  ;;  %s318_s25 = int_to_ptr.vmem [resolvable:$true] %s317_s25 }
  0x2a   : > { %s266_s10 = scalar_lea.hbm %s1397_s1, %s1229_s6  ;;  %s1099_s1 = smov [#allocation3]  }
  0x2b   : > { %s267_s11 = sshll.u32 %s266_s10, 4  ;;  %s1399_s10 = smov 8   ;;  %s268_s11 = int_to_ptr.hbm [resolvable:$true] %s267_s11 }
  0x2c   : > { %776 = dma.hbm_to_vmem [thread:$0]  (!%p1239_p2), %s268_s11, 2048, %s270_s12, %s256_s22, %s1098_s7, %s1400_s30, %s1399_s10  }
  0x2d   : > { %s225_s14 = sshll.u32 %s1401_s0, 4  ;;  %s227_s29 = sshll.u32 %s1099_s1, 4  ;;  %s226_s14 = int_to_ptr.hbm [resolvable:$true] %s225_s14  ;;  %s228_s29 = int_to_ptr.vmem [resolvable:$true] %s227_s29 }
  0x2e   : > { %769 = dma.hbm_to_vmem [thread:$0]  (!%p1194_p10), %s226_s14, 256, %s228_s29, [#allocation4], %s1400_s30, %s1400_s30, %s1399_s10  }
  0x2f   : > { %s283_s11 = scalar_lea.vmem [#allocation8], %s703_s16  ;;  %s314_s1 = scalar_lea.hbm %s1370_s3, %s1229_s6 }
  0x30   : > { %s293_s12 = sshll.u32 %s283_s11, 4  ;;  %s315_s20 = sshll.u32 %s314_s1, 4  ;;  %s294_s12 = int_to_ptr.vmem [resolvable:$true] %s293_s12  ;;  %s316_s20 = int_to_ptr.hbm [resolvable:$true] %s315_s20 }
  0x31   : > { %779 = dma.hbm_to_vmem [thread:$0]  (!%p1239_p2), %s292_s17, 256, %s294_s12, %s256_s22, %s1098_s7, %s1400_s30, %s1399_s10  }
  0x32   : > { %s1402_s9 = sand.u32 1, %s1093_s23   ;;  %329 = sbr.rel (%p1183_p8) target bundleno = 370 (0x172), region = 40 }
  0x33   : > { %s304_s0 = scalar_lea.sflag [#allocation10], %s1402_s9 }
  0x34   : > { %782 = dma.hbm_to_vmem [thread:$0]  (!%p1239_p2), %s316_s20, 256, %s318_s25, %s304_s0, %s1098_s7, %s1400_s30, %s1399_s10  }
  0x37   : > { %1052 = dma.done.wait (%p95_p1), [#allocation4], 256  }
  0x38   : > { %1054 = vsyncadd (%p95_p1), [#allocation4], 4294967040  ;;  %s336_s22 = sand.u32 1, %s1164_s24   ;;  %s1283_s17 = sand.u32 1, %s1077_s19  }
  0x39   : > { %s709_s29 = sshll.u32 %s1283_s17, 7  ;;  %s337_s6 = scalar_lea.sflag [#allocation7], %s336_s22 }
  0x3a   : > { %s1286_s13 = scalar_lea.vmem [#allocation6], %s709_s29 }
  0x3b   : > { %1056 = dma.done.wait (%p1173_p4), %s337_s6, 2304  }
  0x3c   : > { %1058 = vsyncadd (%p1173_p4), %s337_s6, 4294964992  ;;  %s1293_s0 = sshll.u32 %s1283_s17, 4  ;;  %s357_s16 = scalar_lea.sflag [#allocation10], %s336_s22 }
  0x3d   : > { %s350_s28 = scalar_lea.vmem [#allocation8], %s1293_s0  ;;  %s360_s7 = scalar_lea.vmem [#allocation9], %s1293_s0 }
  0x3e   : > { %1060 = dma.done.wait (%p1173_p4), %s357_s16, 256  }
  0x3f   : > { %1062 = vsyncadd (%p1173_p4), %s357_s16, 4294967040 }
  0x40   : > { %1064 = dma.done.wait (%p95_p1), [#allocation10], 2048  }
  0x41   : > { %1066 = vsyncadd (%p95_p1), [#allocation10], 4294965248  ;;  %v433_v0 = vld [vmem:[%s1286_s13 + $0x78] sm:$0xff]  ;;  %v432_v1 = vld [vmem:[%s1286_s13 + $0x70] sm:$0xff]  ;;  %s402_s24 = scalar_lea.vmem [#allocation12], %s1293_s0  ;;  %s715_s26 = sshll.u32 %s1085_s21, 3 }
  0x42   : > { %434 = vmatpush.msra.mxu0 %v433_v0  ;;  %718 = vmatpush.msra.mxu2 %v433_v0  ;;  %v431_v2 = vld [vmem:[%s1286_s13 + $0x68] sm:$0xff]  ;;  %v430_v3 = vld [vmem:[%s1286_s13 + $0x60] sm:$0xff]  ;;  %v429_v4 = vld [vmem:[%s1286_s13 + $0x58] sm:$0xff]  ;;  %s531_s14 = scalar_lea.hbm %s1372_s5, %s715_s26  ;;  %s532_s11 = sshll.u32 %s402_s24, 4  ;;  %s533_s11 = int_to_ptr.vmem [resolvable:$true] %s532_s11 }
  0x43   : > { %v481_v5 = vld [vmem:[#allocation11 + $0x78] sm:$0xff]  ;;  %v480_v6 = vld [vmem:[#allocation11 + $0x70] sm:$0xff]  ;;  %v479_v8 = vld [vmem:[#allocation11 + $0x68] sm:$0xff]  ;;  %s534_s12 = sshll.u32 %s531_s14, 4  ;;  %s518_s4 = scalar_lea.sflag [#allocation5], %s1283_s17  ;;  %s535_s12 = int_to_ptr.hbm [resolvable:$true] %s534_s12 }
  0x44   : > { %435 = vmatpush.msra.mxu0 %v432_v1  ;;  %719 = vmatpush.msra.mxu2 %v432_v1  ;;  %v428_v7 = vld [vmem:[%s1286_s13 + $0x50] sm:$0xff]  ;;  %v427_v9 = vld [vmem:[%s1286_s13 + $0x48] sm:$0xff]  ;;  %v478_v10 = vld [vmem:[#allocation11 + $0x60] sm:$0xff]  ;;  %s1013_s21 = sshra.s32 %s535_s12, 4  ;;  %s1019_s27 = scalar_lea.hbm %s1372_s5, 48  ;;  %s1014_s21 = int_to_ptr.hbm [resolvable:$true] %s1013_s21 }
  0x45   : > { %482 = vmatpush.msra.mxu1 %v481_v5  ;;  %734 = vmatpush.msra.mxu3 %v481_v5  ;;  %v426_v11 = vld [vmem:[%s1286_s13 + $0x40] sm:$0xff]  ;;  %v477_v12 = vld [vmem:[#allocation11 + $0x58] sm:$0xff]  ;;  %v476_v14 = vld [vmem:[#allocation11 + $0x50] sm:$0xff]  ;;  %s1015_s8 = scalar_lea.hbm %s1014_s21, 16  ;;  %p1020_p9 = scmp.lt.s32.totalorder %s1014_s21, %s1372_s5 }
  0x46   : > { %436 = vmatpush.msra.mxu0 %v431_v2  ;;  %720 = vmatpush.msra.mxu2 %v431_v2  ;;  %v425_v13 = vld [vmem:[%s1286_s13 + $0x38] sm:$0xff]  ;;  %v424_v15 = vld [vmem:[%s1286_s13 + $0x30] sm:$0xff]  ;;  %v475_v16 = vld [vmem:[#allocation11 + $0x48] sm:$0xff]  ;;  %p1016_p1 = scmp.ne.s32.totalorder %s1014_s21, %s1015_s8  ;;  %p1021_p10 = scmp.lt.s32.totalorder %s1019_s27, %s1015_s8 }
  0x47   : > { %483 = vmatpush.msra.mxu1 %v480_v6  ;;  %735 = vmatpush.msra.mxu3 %v480_v6  ;;  %v423_v17 = vld [vmem:[%s1286_s13 + $0x28] sm:$0xff]  ;;  %v474_v18 = vld [vmem:[#allocation11 + $0x40] sm:$0xff]  ;;  %v473_v20 = vld [vmem:[#allocation11 + $0x38] sm:$0xff] }
  0x48   : > { %437 = vmatpush.msra.mxu0 %v430_v3  ;;  %721 = vmatpush.msra.mxu2 %v430_v3  ;;  %v422_v19 = vld [vmem:[%s1286_s13 + $0x20] sm:$0xff]  ;;  %v421_v21 = vld [vmem:[%s1286_s13 + $0x18] sm:$0xff]  ;;  %v472_v22 = vld [vmem:[#allocation11 + $0x30] sm:$0xff]  ;;  %p1017_p4 = pnand %p1016_p1, %p1216_p3  ;;  %p1022_p11 = por %p1021_p10, %p1020_p9 }
  0x49   : > { %484 = vmatpush.msra.mxu1 %v479_v8  ;;  %736 = vmatpush.msra.mxu3 %v479_v8  ;;  %v420_v23 = vld [vmem:[%s1286_s13 + $0x10] sm:$0xff]  ;;  %v471_v24 = vld [vmem:[#allocation11 + $0x28] sm:$0xff]  ;;  %v470_v26 = vld [vmem:[#allocation11 + $0x20] sm:$0xff] }
  0x4a   : > { %438 = vmatpush.msra.mxu0 %v429_v4  ;;  %722 = vmatpush.msra.mxu2 %v429_v4  ;;  %v419_v25 = vld [vmem:[%s1286_s13 + $0x8] sm:$0xff]  ;;  %v418_v27 = vld [vmem:[%s1286_s13] sm:$0xff]  ;;  %v416_v28 = vld [vmem:[#allocation3] sm:$0xff]  ;;  %p1018_p8 = pneg %p1017_p4 }
  0x4b   : > { %485 = vmatpush.msra.mxu1 %v478_v10  ;;  %737 = vmatpush.msra.mxu3 %v478_v10  ;;  %v417_v29 = vld [vmem:[#allocation3 + $0x8] sm:$0xff]  ;;  %v468_v31 = vld [vmem:[#allocation11 + $0x10] sm:$0xff]  ;;  %v467_v32 = vld [vmem:[#allocation11 + $0x8] sm:$0xff] }
  0x4c   : > { %439 = vmatpush.msra.mxu0 %v428_v7  ;;  %723 = vmatpush.msra.mxu2 %v428_v7  ;;  %v469_v30 = vld [vmem:[#allocation11 + $0x18] sm:$0xff]  ;;  %v466_v33 = vld [vmem:[#allocation11] sm:$0xff]  ;;  %p1023_p12 = pnand %p1022_p11, %p1018_p8 }
  0x4d   : > { %486 = vmatpush.msra.mxu1 %v477_v12  ;;  %738 = vmatpush.msra.mxu3 %v477_v12  ;;  %v505_v36 = vld [vmem:[%s350_s28] sm:$0xff]  ;;  %v506_v42 = vld [vmem:[%s350_s28 + $0x8] sm:$0xff] }
  0x4e   : > { %440 = vmatpush.msra.mxu0 %v427_v9  ;;  %724 = vmatpush.msra.mxu2 %v427_v9  ;;  %v509_v37 = vld [vmem:[%s360_s7] sm:$0xff]  ;;  %v510_v43 = vld [vmem:[%s360_s7 + $0x8] sm:$0xff] }
  0x4f   : > { %487 = vmatpush.msra.mxu1 %v476_v14  ;;  %739 = vmatpush.msra.mxu3 %v476_v14 }
  0x50   : > { %441 = vmatpush.msra.mxu0 %v426_v11  ;;  %725 = vmatpush.msra.mxu2 %v426_v11 }
  0x51   : > { %488 = vmatpush.msra.mxu1 %v475_v16  ;;  %740 = vmatpush.msra.mxu3 %v475_v16 }
  0x52   : > { %442 = vmatpush.msra.mxu0 %v425_v13  ;;  %726 = vmatpush.msra.mxu2 %v425_v13 }
  0x53   : > { %489 = vmatpush.msra.mxu1 %v474_v18  ;;  %741 = vmatpush.msra.mxu3 %v474_v18 }
  0x54   : > { %443 = vmatpush.msra.mxu0 %v424_v15  ;;  %727 = vmatpush.msra.mxu2 %v424_v15 }
  0x55   : > { %490 = vmatpush.msra.mxu1 %v473_v20  ;;  %742 = vmatpush.msra.mxu3 %v473_v20 }
  0x56   : > { %444 = vmatpush.msra.mxu0 %v423_v17  ;;  %728 = vmatpush.msra.mxu2 %v423_v17 }
  0x57   : > { %491 = vmatpush.msra.mxu1 %v472_v22  ;;  %743 = vmatpush.msra.mxu3 %v472_v22 }
  0x58   : > { %445 = vmatpush.msra.mxu0 %v422_v19  ;;  %729 = vmatpush.msra.mxu2 %v422_v19 }
  0x59   : > { %492 = vmatpush.msra.mxu1 %v471_v24  ;;  %744 = vmatpush.msra.mxu3 %v471_v24 }
  0x5a   : > { %446 = vmatpush.msra.mxu0 %v421_v21  ;;  %730 = vmatpush.msra.mxu2 %v421_v21 }
  0x5b   : > { %493 = vmatpush.msra.mxu1 %v470_v26  ;;  %745 = vmatpush.msra.mxu3 %v470_v26 }
  0x5c   : > { %447 = vmatpush.msra.mxu0 %v420_v23  ;;  %731 = vmatpush.msra.mxu2 %v420_v23 }
  0x5d   : > { %494 = vmatpush.msra.mxu1 %v469_v30  ;;  %746 = vmatpush.msra.mxu3 %v469_v30 }
  0x5e   : > { %448 = vmatpush.msra.mxu0 %v419_v25  ;;  %732 = vmatpush.msra.mxu2 %v419_v25 }
  0x5f   : > { %495 = vmatpush.msra.mxu1 %v468_v31  ;;  %747 = vmatpush.msra.mxu3 %v468_v31 }
  0x60   : > { %449 = vmatpush.msra.mxu0 %v418_v27  ;;  %733 = vmatpush.msra.mxu2 %v418_v27 }
  0x61   : > { %450 = vmatmul.f32.vlgmr.msra.gmra.mxu0 %v416_v28  ;;  %453 = vmatmul.f32.vlgmr.msra.gmra.mxu2 %v417_v29 }
  0x62   : > { %496 = vmatpush.msra.mxu1 %v467_v32  ;;  %748 = vmatpush.msra.mxu3 %v467_v32 }
  0x64   : > { %497 = vmatpush.msra.mxu1 %v466_v33  ;;  %749 = vmatpush.msra.mxu3 %v466_v33 }
  0xde   : > { %v451_v34 = vpop.f32.mrf.mxu0 }
  0xdf   : > { %498 = vmatmul.f32.vlgmr.msra.gmra.mxu1 %v451_v34  ;;  %v507_v39 = vmul.f32 %v505_v36, %v451_v34 }
  0xe4   : > { %v454_v35 = vpop.f32.mrf.mxu2 }
  0xe5   : > { %501 = vmatmul.f32.vlgmr.msra.gmra.mxu3 %v454_v35  ;;  %v508_v45 = vmul.f32 %v506_v42, %v454_v35 }
 0x15c   : > { %v499_v38 = vpop.f32.mrf.mxu1 }
 0x15d   : > { %v511_v40 = vmul.f32 %v509_v37, %v499_v38 }
 0x15f   : > { %v513_v41 = vadd.f32 %v511_v40, %v507_v39 }
 0x161   : > { %515 = vst [vmem:[%s402_s24] sm:$0xff] %v513_v41 }
 0x168   : > { %v502_v44 = vpop.f32.mrf.mxu3 }
 0x169   : > { %v512_v46 = vmul.f32 %v510_v43, %v502_v44 }
 0x16b   : > { %v514_v47 = vadd.f32 %v512_v46, %v508_v45 }
 0x16d   : > { %516 = vst [vmem:[%s402_s24 + $0x8] sm:$0xff] %v514_v47 }
 0x16e   : > { %1026 = shalt.err (!%p1023_p12)
}
 0x16f   : > { %s1100_s22 = smov 128   ;;  %s1101_s17 = smov 384  }
 0x170   : > { %s1102_s29 = smov 8  }
 0x171   : > { %764 = dma.vmem_to_hbm [thread:$0]  (%p1216_p3), %s533_s11, 256, %s535_s12, %s518_s4, %s1100_s22, %s1101_s17, %s1102_s29  }
 0x172 PF: > { %p792_p13 = scmp.ge.s32.totalorder %s1093_s23, 2  ;;  %s549_s13 = sand.u32 1, %s1073_s18  }
 0x173   : > { %s550_s0 = scalar_lea.sflag [#allocation5], %s549_s13 }
 0x174   : > { %p784_p0 = pnand %p792_p13, %p1178_p6 }
 0x176   : > { %p785_p5 = pneg %p784_p0 }
 0x178   : > { %1068 = dma.done.wait (%p785_p5), %s550_s0, 256  }
 0x179   : > { %1070 = vsyncadd (%p785_p5), %s550_s0, 4294967040  ;;  %s25_s23 = sadd.s32 1, %s1093_s23   ;;  %s1404_s28 = sld [smem:[#allocation18_spill]] }
 0x17a   : > { %p22_p7 = scmp.ge.s32.totalorder %s25_s23, 5   ;;  %s1405_s20 = sld [smem:[#allocation22_spill]] }
 0x17b   : > { %s1406_s21 = sld [smem:[#allocation19_spill]]  ;;  %s1408_s18 = smov %s1077_s19 }
 0x17c   : > { %s1407_s22 = sld [smem:[#allocation21_spill]]  ;;  %24 = sbr.rel (!%p22_p7) target bundleno = 13 (0xd), region = 127 }
 0x17f   : > { %s1409_s19 = smov %s1404_s28 }
 0x181   :  { %556 = vsyncpa [#allocation4], 1 }
 0x182   :  { %558 = vsyncpa [#allocation4 + $0x1], 1 }
 0x183   :  { %559 = vsyncpa [#allocation7], 1 }
 0x184   :  { %561 = vsyncpa [#allocation7 + $0x1], 1 }
 0x185   :  { %562 = vsyncpa [#allocation10], 1 }
 0x186   :  { %564 = vsyncpa [#allocation10 + $0x1], 1 }
 0x187   :  { %565 = vsyncpa [#allocation5], 1 }
 0x188   :  { %567 = vsyncpa [#allocation5 + $0x1], 1 }

</bundles_post_ra>
